<compile_context>
chip_gen: v6e
topology: v6e:2x2x1
jax: 0.10.0
libtpu: 0.0.40
codegen_flags: <defaults>
</compile_context>

<pallas_src>
import jax
import jax.numpy as jnp
from jax.experimental import pallas as pl
from jax.experimental.pallas import tpu as pltpu


def _round_down(x, m):
    return (x // m) * m


def _vmem_capacity_bytes():
    """Per-TensorCore VMEM capacity; conservative fallback if the query fails."""
    try:
        return int(pltpu.get_tpu_info().vmem_capacity_bytes)
    except Exception:
        return 64 << 20  # v7x per-core VMEM = smallest across generations


def _coord_attn_kernel(x_ref, w1t_ref, b1_ref, w2t_ref, b2_ref, o_ref):
    # x_ref  : (TM, HW)   row tile of the flattened (B*C, H*W) input
    # w1t_ref: (HW, 64)   fc1 weight, pre-transposed to (in, out) layout
    # b1_ref : (1, 64)
    # w2t_ref: (64, HW)   fc2 weight, pre-transposed to (in, out) layout
    # b2_ref : (1, HW)
    # o_ref  : (TM, HW)   output row tile
    x = x_ref[...]
    # fc1: (TM, HW) @ (HW, 64) -> (TM, 64), f32 accumulation on the MXU.
    h = jnp.dot(x, w1t_ref[...], preferred_element_type=jnp.float32)
    h = jnp.maximum(h + b1_ref[...], 0.0)  # ReLU
    # fc2: (TM, 64) @ (64, HW) -> (TM, HW)
    att = jnp.dot(h, w2t_ref[...], preferred_element_type=jnp.float32)
    att = att + b2_ref[...]
    o_ref[...] = (x * att).astype(o_ref.dtype)


def coordinate_attention(x, w1, b1, w2, b2, *, tm=None):
    """x: (B, C, H, W) float32.
    w1: (64, H*W), b1: (64,), w2: (H*W, 64), b2: (H*W,)  (nn.Linear convention)."""
    B, C, H, W = x.shape
    HW = H * W
    M = B * C
    HID = w1.shape[0]
    itemsize = 4  # f32

    # One-time tiny transposes (HID x HW weights) so the kernel matmuls are in
    # plain (M,K)@(K,N) form -- no per-grid-step transpose feeds the MXU.
    w1t = w1.T                    # (HW, HID)
    w2t = w2.T                    # (HID, HW)
    b1_2d = b1.reshape(1, HID)
    b2_2d = b2.reshape(1, HW)

    # Free reshape of the activation (contiguous view) -- no padding, no extra
    # HBM passes.
    x_flat = x.reshape(M, HW)

    # ---- VMEM-aware row-tile size -------------------------------------------
    vmem_cap = _vmem_capacity_bytes()
    # Weight/bias working set (double-buffered by the auto-pipeline, though with
    # a constant index_map they are only DMA'd once).
    weight_bytes = 2 * (2 * HID * HW + HID + HW) * itemsize
    # Steady-state bytes per x row: double-buffered x tile + double-buffered out
    # tile + ~2 tile-sized f32 temporaries (x value, att) + hidden activations.
    per_row_bytes = 6 * HW * itemsize + 2 * HID * itemsize
    # Keep the whole footprint comfortably inside every generation's VMEM
    # (v7x has only 64 MiB per TensorCore).
    budget = min(vmem_cap * 3 // 4, 48 << 20) - weight_bytes
    budget = max(budget, 1 << 20)

    if tm is None:
        tm = budget // per_row_bytes
        tm = min(tm, 4096)            # diminishing returns beyond this
    if tm >= M:
        tm = M                        # full-extent block: always layout-legal
    else:
        tm = max(8, _round_down(tm, 8))   # f32 sublane multiple
    grid_m = pl.cdiv(M, tm)           # ragged last block -> Pallas masks the OOB rows

    est_footprint = weight_bytes + tm * per_row_bytes
    vmem_limit = min(vmem_cap - (4 << 20),
                     max(est_footprint + (8 << 20), 32 << 20))

    out_flat = pl.pallas_call(
        _coord_attn_kernel,
        out_shape=jax.ShapeDtypeStruct((M, HW), x.dtype),
        grid_spec=pltpu.PrefetchScalarGridSpec(
            num_scalar_prefetch=0,
            grid=(grid_m,),
            in_specs=[
                pl.BlockSpec((tm, HW), lambda i: (i, 0)),    # x: pipelined row tiles
                pl.BlockSpec((HW, HID), lambda i: (0, 0)),   # w1.T: VMEM-resident
                pl.BlockSpec((1, HID), lambda i: (0, 0)),    # b1:   VMEM-resident
                pl.BlockSpec((HID, HW), lambda i: (0, 0)),   # w2.T: VMEM-resident
                pl.BlockSpec((1, HW), lambda i: (0, 0)),     # b2:   VMEM-resident
            ],
            out_specs=pl.BlockSpec((tm, HW), lambda i: (i, 0)),
        ),
        compiler_params=pltpu.CompilerParams(
            # Row tiles are independent -> shard them across TensorCores.
            dimension_semantics=("parallel",),
            # Explicit scoped-VMEM limit so the larger tiles also fit v5e's
            # 16 MiB default while staying under v7x's 64 MiB physical VMEM.
            vmem_limit_bytes=int(vmem_limit),
        ),
    )(x_flat, w1t, b1_2d, w2t, b2_2d)

    return out_flat.reshape(B, C, H, W)


def _reference(x, w1, b1, w2, b2):
    B, C, H, W = x.shape
    xf = x.reshape(B, C, H * W)
    h = jnp.maximum(xf @ w1.T + b1, 0.0)
    att = h @ w2.T + b2
    return x * att.reshape(B, C, H, W)


if __name__ == "__main__":
    key = jax.random.PRNGKey(0)
    B, C, H, W = 2, 4, 16, 16
    HW = H * W
    HIDDEN = 64

    k_x, k_w1, k_b1, k_w2, k_b2 = jax.random.split(key, 5)
    x = jax.random.normal(k_x, (B, C, H, W), dtype=jnp.float32)

    # Deterministic parameter init (uniform, like nn.Linear's default scheme).
    bound1 = 1.0 / (HW ** 0.5)
    w1 = jax.random.uniform(k_w1, (HIDDEN, HW), jnp.float32, -bound1, bound1)
    b1 = jax.random.uniform(k_b1, (HIDDEN,), jnp.float32, -bound1, bound1)
    bound2 = 1.0 / (HIDDEN ** 0.5)
    w2 = jax.random.uniform(k_w2, (HW, HIDDEN), jnp.float32, -bound2, bound2)
    b2 = jax.random.uniform(k_b2, (HW,), jnp.float32, -bound2, bound2)

    out = coordinate_attention(x, w1, b1, w2, b2)
    out = jax.block_until_ready(out)

    ref = _reference(x, w1, b1, w2, b2)
    assert out.shape == (B, C, H, W)
    assert jnp.allclose(out, ref, atol=1e-4, rtol=1e-4), "mismatch vs reference"

    print("KERNEL_OK")
</pallas_src>

<mosaic_0001>
module attributes {stable_mosaic.version = 11 : i64} {
  func.func @_coord_attn_kernel(%arg0: i32, %arg1: memref<8x256xf32, #tpu.memory_space<vmem>>, %arg2: memref<256x64xf32, #tpu.memory_space<vmem>>, %arg3: memref<1x64xf32, #tpu.memory_space<vmem>>, %arg4: memref<64x256xf32, #tpu.memory_space<vmem>>, %arg5: memref<1x256xf32, #tpu.memory_space<vmem>>, %arg6: memref<8x256xf32, #tpu.memory_space<vmem>>) attributes {dimension_semantics = [#tpu.dimension_semantics<parallel>], iteration_bounds = array<i64: 1>, scalar_prefetch = 0 : i64, scratch_operands = 0 : i64, tpu.core_type = #tpu.core_type<tc>, window_params = [{transform_indices = @transform_0, window_bounds = array<i64: 8, 256>}, {pipeline_mode = #tpu.pipeline_mode<synchronous>, transform_indices = @transform_1, window_bounds = array<i64: 256, 64>}, {pipeline_mode = #tpu.pipeline_mode<synchronous>, transform_indices = @transform_2, window_bounds = array<i64: 1, 64>}, {pipeline_mode = #tpu.pipeline_mode<synchronous>, transform_indices = @transform_3, window_bounds = array<i64: 64, 256>}, {pipeline_mode = #tpu.pipeline_mode<synchronous>, transform_indices = @transform_4, window_bounds = array<i64: 1, 256>}, {transform_indices = @transform_5, window_bounds = array<i64: 8, 256>}]} {
    %c0 = arith.constant 0 : index
    %c0_0 = arith.constant 0 : index
    %0 = vector.load %arg1[%c0, %c0_0] : memref<8x256xf32, #tpu.memory_space<vmem>>, vector<8x256xf32>
    %c0_1 = arith.constant 0 : index
    %c0_2 = arith.constant 0 : index
    %1 = vector.load %arg2[%c0_1, %c0_2] : memref<256x64xf32, #tpu.memory_space<vmem>>, vector<256x64xf32>
    %cst = arith.constant dense<0.000000e+00> : vector<8x64xf32>
    %2 = tpu.matmul %0, %1, %cst {dimension_numbers = #tpu.dot_dimension_numbers<[1], [0], [0], [1], [0, 0, 1, 1], [], []>} : vector<8x256xf32>, vector<256x64xf32>, vector<8x64xf32> -> vector<8x64xf32>
    %c0_3 = arith.constant 0 : index
    %c0_4 = arith.constant 0 : index
    %3 = vector.load %arg3[%c0_3, %c0_4] : memref<1x64xf32, #tpu.memory_space<vmem>>, vector<1x64xf32>
    %4 = vector.broadcast %3 : vector<1x64xf32> to vector<8x64xf32>
    %5 = arith.addf %2, %4 : vector<8x64xf32>
    %cst_5 = arith.constant 0.000000e+00 : f32
    %6 = vector.broadcast %cst_5 : f32 to vector<8x64xf32>
    %7 = arith.maximumf %5, %6 : vector<8x64xf32>
    %c0_6 = arith.constant 0 : index
    %c0_7 = arith.constant 0 : index
    %8 = vector.load %arg4[%c0_6, %c0_7] : memref<64x256xf32, #tpu.memory_space<vmem>>, vector<64x256xf32>
    %cst_8 = arith.constant dense<0.000000e+00> : vector<8x256xf32>
    %9 = tpu.matmul %7, %8, %cst_8 {dimension_numbers = #tpu.dot_dimension_numbers<[1], [0], [0], [1], [0, 0, 1, 1], [], []>} : vector<8x64xf32>, vector<64x256xf32>, vector<8x256xf32> -> vector<8x256xf32>
    %c0_9 = arith.constant 0 : index
    %c0_10 = arith.constant 0 : index
    %10 = vector.load %arg5[%c0_9, %c0_10] : memref<1x256xf32, #tpu.memory_space<vmem>>, vector<1x256xf32>
    %11 = vector.broadcast %10 : vector<1x256xf32> to vector<8x256xf32>
    %12 = arith.addf %9, %11 : vector<8x256xf32>
    %13 = arith.mulf %0, %12 : vector<8x256xf32>
    %c0_11 = arith.constant 0 : index
    %c0_12 = arith.constant 0 : index
    %14 = vector.load %arg6[%c0_11, %c0_12] : memref<8x256xf32, #tpu.memory_space<vmem>>, vector<8x256xf32>
    tpu.vector_store %arg6[%c0_11, %c0_12], %13 {strides = array<i32>} : memref<8x256xf32, #tpu.memory_space<vmem>>, vector<8x256xf32>,
    return
  }
  func.func @transform_0(%arg0: i32) -> (i32, i32) {
    %c0_i32 = arith.constant 0 : i32
    %c0_i32_0 = arith.constant 0 : i32
    return %arg0, %c0_i32 : i32, i32
  }
  func.func @transform_1(%arg0: i32) -> (i32, i32) {
    %c0_i32 = arith.constant 0 : i32
    %c0_i32_0 = arith.constant 0 : i32
    %c0_i32_1 = arith.constant 0 : i32
    return %c0_i32, %c0_i32_0 : i32, i32
  }
  func.func @transform_2(%arg0: i32) -> (i32, i32) {
    %c0_i32 = arith.constant 0 : i32
    %c0_i32_0 = arith.constant 0 : i32
    %c0_i32_1 = arith.constant 0 : i32
    return %c0_i32, %c0_i32_0 : i32, i32
  }
  func.func @transform_3(%arg0: i32) -> (i32, i32) {
    %c0_i32 = arith.constant 0 : i32
    %c0_i32_0 = arith.constant 0 : i32
    %c0_i32_1 = arith.constant 0 : i32
    return %c0_i32, %c0_i32_0 : i32, i32
  }
  func.func @transform_4(%arg0: i32) -> (i32, i32) {
    %c0_i32 = arith.constant 0 : i32
    %c0_i32_0 = arith.constant 0 : i32
    %c0_i32_1 = arith.constant 0 : i32
    return %c0_i32, %c0_i32_0 : i32, i32
  }
  func.func @transform_5(%arg0: i32) -> (i32, i32) {
    %c0_i32 = arith.constant 0 : i32
    %c0_i32_0 = arith.constant 0 : i32
    return %arg0, %c0_i32 : i32, i32
  }
}

</mosaic_0001>

<bundles_post_ra>
// kernel: tpu_custom_call.1
= control target key start
LH: loop header
LB: loop body
LE: loop exit
PB: predicated region body
PF: predicated region fallthrough
CT: control target
= control target key end

     0   :  { %s510_s0 = inlined_call_operand.vmem [shape: f32[8,256], index: 0, kind: input, shape index: {}]   ;;  %s511_s1 = inlined_call_operand.vmem [shape: f32[256,64], index: 1, kind: input, shape index: {}]   ;;  %s512_s2 = inlined_call_operand.vmem [shape: f32[1,64], index: 2, kind: input, shape index: {}]   ;;  %s513_s3 = inlined_call_operand.vmem [shape: f32[64,256], index: 3, kind: input, shape index: {}]   ;;  %s514_s4 = inlined_call_operand.vmem [shape: f32[1,256], index: 4, kind: input, shape index: {}]   ;;  %s515_s5 = inlined_call_operand.hbm [shape: f32[8,256], index: 5, kind: output, shape index: {}]  }
   0x1   :  { %v54_v0 = vld [vmem:[%s511_s1 + $0xf8] sm:$0xff]  ;;  %v53_v2 = vld [vmem:[%s511_s1 + $0xf0] sm:$0xff]  ;;  %v52_v4 = vld [vmem:[%s511_s1 + $0xe8] sm:$0xff] }
   0x2   :  { %v38_v1 = vld [vmem:[%s511_s1 + $0x78] sm:$0xff]  ;;  %256 = vmatprep.subr.mxu0 %v54_v0  ;;  %v37_v3 = vld [vmem:[%s511_s1 + $0x70] sm:$0xff]  ;;  %v36_v5 = vld [vmem:[%s511_s1 + $0x68] sm:$0xff] }
   0x3   :  { %257 = vmatpush3.msra.mxu0 %v38_v1  ;;  %v51_v6 = vld [vmem:[%s511_s1 + $0xe0] sm:$0xff]  ;;  %v50_v8 = vld [vmem:[%s511_s1 + $0xd8] sm:$0xff]  ;;  %v49_v10 = vld [vmem:[%s511_s1 + $0xd0] sm:$0xff] }
   0x4   :  { %258 = vmatprep.subr.mxu0 %v53_v2  ;;  %v35_v7 = vld [vmem:[%s511_s1 + $0x60] sm:$0xff]  ;;  %v34_v9 = vld [vmem:[%s511_s1 + $0x58] sm:$0xff]  ;;  %v33_v11 = vld [vmem:[%s511_s1 + $0x50] sm:$0xff] }
   0x5   :  { %259 = vmatpush3.msra.mxu0 %v37_v3  ;;  %v48_v12 = vld [vmem:[%s511_s1 + $0xc8] sm:$0xff]  ;;  %v148_v15 = vld [vmem:[%s513_s3 + $0x78] sm:$0xff]  ;;  %v147_v16 = vld [vmem:[%s513_s3 + $0x70] sm:$0xff] }
   0x6   :  { %260 = vmatprep.subr.mxu0 %v52_v4  ;;  %v389_v13 = vld [vmem:[%s510_s0 + $0x8] sm:$0xff]  ;;  %v47_v17 = vld [vmem:[%s511_s1 + $0xc0] sm:$0xff]  ;;  %181 = vmatprep.subr.mxu1 %v148_v15  ;;  %v144_v21 = vld [vmem:[%s513_s3 + $0x58] sm:$0xff] }
   0x7   :  { %261 = vmatpush3.msra.mxu0 %v36_v5  ;;  %v32_v14 = vld [vmem:[%s511_s1 + $0x48] sm:$0xff]  ;;  %126 = vmatprep.mubr.f32.mxu0 %v389_v13  ;;  %v145_v19 = vld [vmem:[%s513_s3 + $0x60] sm:$0xff] }
   0x8   :  { %262 = vmatprep.subr.mxu0 %v51_v6  ;;  %v146_v18 = vld [vmem:[%s513_s3 + $0x68] sm:$0xff]  ;;  %v31_v20 = vld [vmem:[%s511_s1 + $0x40] sm:$0xff]  ;;  %182 = vmatpush1.msra.mxu1 %v147_v16 }
   0x9   :  { %263 = vmatpush3.msra.mxu0 %v35_v7 }
   0xa   :  { %264 = vmatprep.subr.mxu0 %v50_v8 }
   0xb   :  { %265 = vmatpush3.msra.mxu0 %v34_v9 }
   0xc   :  { %266 = vmatprep.subr.mxu0 %v49_v10 }
   0xd   :  { %267 = vmatpush3.msra.mxu0 %v33_v11 }
   0xe   :  { %268 = vmatprep.subr.mxu0 %v48_v12 }
   0xf   :  { %10 = vsyncpa [#allocation3], 0  ;;  %269 = vmatpush3.msra.mxu0 %v32_v14  ;;  %v46_v22 = vld [vmem:[%s511_s1 + $0xb8] sm:$0xff]  ;;  %183 = vmatprep.subr.mxu1 %v146_v18  ;;  %v143_v23 = vld [vmem:[%s513_s3 + $0x50] sm:$0xff]  ;;  %v315_v50 = vmov 0.0   ;;  %vm161_vm0 = vcmask 523264   ;;  %v151_v57 = vlaneseq }
  0x10   :  { %270 = vmatprep.subr.mxu0 %v47_v17  ;;  %v30_v24 = vld [vmem:[%s511_s1 + $0x38] sm:$0xff]  ;;  %184 = vmatpush1.msra.mxu1 %v145_v19  ;;  %v142_v25 = vld [vmem:[%s513_s3 + $0x48] sm:$0xff]  ;;  %v45_v26 = vld [vmem:[%s511_s1 + $0xb0] sm:$0xff] }
  0x11   :  { %271 = vmatpush3.msra.mxu0 %v31_v20  ;;  %185 = vmatprep.subr.mxu1 %v144_v21  ;;  %v29_v27 = vld [vmem:[%s511_s1 + $0x30] sm:$0xff]  ;;  %v44_v28 = vld [vmem:[%s511_s1 + $0xa8] sm:$0xff]  ;;  %v43_v30 = vld [vmem:[%s511_s1 + $0xa0] sm:$0xff]  ;;  %v152_v58 = vshrl.u32 %v151_v57, 7 }
  0x12   :  { %272 = vmatprep.subr.mxu0 %v46_v22  ;;  %186 = vmatpush1.msra.mxu1 %v143_v23  ;;  %v28_v29 = vld [vmem:[%s511_s1 + $0x28] sm:$0xff]  ;;  %v27_v31 = vld [vmem:[%s511_s1 + $0x20] sm:$0xff]  ;;  %v42_v32 = vld [vmem:[%s511_s1 + $0x98] sm:$0xff] }
  0x13   :  { %273 = vmatpush3.msra.mxu0 %v30_v24  ;;  %187 = vmatprep.subr.mxu1 %v142_v25  ;;  %v26_v33 = vld [vmem:[%s511_s1 + $0x18] sm:$0xff]  ;;  %v41_v34 = vld [vmem:[%s511_s1 + $0x90] sm:$0xff]  ;;  %v40_v36 = vld [vmem:[%s511_s1 + $0x88] sm:$0xff]  ;;  %v153_v59 = vsub.s32 0, %v152_v58  ;;  %v157_v61 = vsub.s32 1, %v152_v58 }
  0x14   :  { %274 = vmatprep.subr.mxu0 %v45_v26  ;;  %v25_v35 = vld [vmem:[%s511_s1 + $0x10] sm:$0xff]  ;;  %v24_v37 = vld [vmem:[%s511_s1 + $0x8] sm:$0xff]  ;;  %v39_v38 = vld [vmem:[%s511_s1 + $0x80] sm:$0xff]  ;;  %229 = vmatprep.mubr.f32.mxu1 %v315_v50 }
  0x15   :  { %275 = vmatpush3.msra.mxu0 %v29_v27  ;;  %v23_v39 = vld [vmem:[%s511_s1] sm:$0xff]  ;;  %v140_v42 = vld [vmem:[%s513_s3 + $0x38] sm:$0xff]  ;;  %v139_v43 = vld [vmem:[%s513_s3 + $0x30] sm:$0xff] }
  0x16   :  { %276 = vmatprep.subr.mxu0 %v44_v28  ;;  %v21_v40 = vld [vmem:[%s510_s0] sm:$0xff]  ;;  %v138_v44 = vld [vmem:[%s513_s3 + $0x28] sm:$0xff]  ;;  %v136_v46 = vld [vmem:[%s513_s3 + $0x18] sm:$0xff] }
  0x17   :  { %277 = vmatpush3.msra.mxu0 %v28_v29  ;;  %v141_v41 = vld [vmem:[%s513_s3 + $0x40] sm:$0xff]  ;;  %v135_v47 = vld [vmem:[%s513_s3 + $0x10] sm:$0xff]  ;;  %v134_v48 = vld [vmem:[%s513_s3 + $0x8] sm:$0xff] }
  0x18   :  { %278 = vmatprep.subr.mxu0 %v43_v30  ;;  %188 = vmatpush1.msra.mxu1 %v141_v41  ;;  %v137_v45 = vld [vmem:[%s513_s3 + $0x20] sm:$0xff] }
  0x19   :  { %279 = vmatpush3.msra.mxu0 %v27_v31  ;;  %189 = vmatprep.subr.mxu1 %v140_v42  ;;  %v133_v49 = vld [vmem:[%s513_s3] sm:$0xff] }
  0x1a   :  { %280 = vmatprep.subr.mxu0 %v42_v32  ;;  %190 = vmatpush1.msra.mxu1 %v139_v43  ;;  %v254_v52 = vld [vmem:[%s512_s2] ss:$0 sm:$0xff]  ;;  %s316_s2 = smov [#allocation2]  }
  0x1b   :  { %281 = vmatpush3.msra.mxu0 %v26_v33  ;;  %191 = vmatprep.subr.mxu1 %v138_v44  ;;  %v149_v60 = vld [vmem:[%s514_s4] sm:$0x3]  ;;  %s246_s3 = sshll.u32 %s316_s2, 4  ;;  %s247_s3 = int_to_ptr.vmem [resolvable:$true] %s246_s3 }
  0x1c   :  { %282 = vmatprep.subr.mxu0 %v41_v34  ;;  %192 = vmatpush1.msra.mxu1 %v137_v45  ;;  %v154_v62 = vrot.slane %v149_v60, %v153_v59  ;;  %v158_v63 = vrot.slane %v149_v60, %v157_v61  ;;  %s293_s20 = scalar_lea.vmem %s247_s3, 256  ;;  %p298_p1 = scmp.lt.s32.totalorder %s247_s3, %s247_s3 }
  0x1d   :  { %283 = vmatpush3.msra.mxu0 %v25_v35  ;;  %193 = vmatprep.subr.mxu1 %v136_v46  ;;  %p294_p0 = scmp.ne.s32.totalorder %s247_s3, %s293_s20  ;;  %p299_p2 = scmp.lt.s32.totalorder %s293_s20, %s293_s20 }
  0x1e   :  { %284 = vmatprep.subr.mxu0 %v40_v36  ;;  %194 = vmatpush1.msra.mxu1 %v135_v47 }
  0x1f   :  { %285 = vmatpush3.msra.mxu0 %v24_v37  ;;  %195 = vmatprep.subr.mxu1 %v134_v48  ;;  %p300_p3 = por %p299_p2, %p298_p1 }
  0x20   :  { %286 = vmatprep.subr.mxu0 %v39_v38  ;;  %196 = vmatpush1.msra.mxu1 %v133_v49 }
  0x21   :  { %287 = vmatpush3.msra.mxu0 %v23_v39  ;;  %p301_p4 = pnand %p300_p3, %p294_p0 }
  0x22   :  { %127 = vmatmul.mubr.f32.vlgmr.msra.gmra.mxu0 %v21_v40 }
  0xe2   :  { %v288_v51 = vpop.f32.mrf.mxu0 }
  0xe4   :  { %v289_v53 = vpop.f32.mrf.mxu0 }
  0xe5   :  { %v290_v54 = vadd.f32 %v289_v53, %v288_v51 }
  0xe7   :  { %v129_v55 = vadd.f32 %v290_v54, %v254_v52 }
  0xe9   :  { %v132_v56 = vmax.f32 %v129_v55, 0.0 }
  0xeb   :  { %255 = vmatmul.mubr.msk.f32.vlgmr.msra.gmra.mxu1 %vm161_vm0, %v132_v56 }
 0x1ab   :  { %v231_v0 = vpop.f32.mrf.mxu1 }
 0x1ac   :  { %v232_v1 = vadd.f32 %v231_v0, %v154_v62 }
 0x1ad   :  { %v233_v2 = vpop.f32.mrf.mxu1 }
 0x1ae   :  { %v236_v3 = vmul.f32 %v232_v1, %v21_v40  ;;  %v234_v4 = vadd.f32 %v233_v2, %v158_v63 }
 0x1b0   :  { %238 = vst [vmem:[#allocation2] sm:$0xff] %v236_v3  ;;  %v237_v5 = vmul.f32 %v234_v4, %v389_v13 }
 0x1b2   :  { %239 = vst [vmem:[#allocation2 + $0x8] sm:$0xff] %v237_v5 }
 0x1b3   :  { %304 = shalt.err (!%p301_p4)
}
 0x1b4   :  { %249 = dma.vmem_to_hbm [thread:$0]  %s247_s3, 256, %s515_s5, [#allocation3]  }
 0x1b5   :  { %313 = dma.done.wait [#allocation3], 256  }
 0x1b6   :  { %314 = vsyncadd [#allocation3], 4294967040 }
 0x1b7   :  { %253 = vsyncpa [#allocation3], 1 }

</bundles_post_ra>
